<compile_context>
chip_gen: v6e
topology: v6e:2x2x1
jax: 0.10.0
libtpu: 0.0.40
codegen_flags: <defaults>
</compile_context>

<pallas_src>
import functools

import jax
import jax.numpy as jnp
from jax import lax
from jax.experimental import pallas as pl
from jax.experimental.pallas import tpu as pltpu

HIDDEN = 32      # config['hidden_size']
VOCAB = 50       # config['vocab_size'] (embedding rows = VOCAB + 1, row 0 = pad)
MAX_LEN = 8      # config['max_length']
BATCH = 2
_SUB = 8         # sublane tile: pad sentence-rows to a multiple of this
_LANE = 128      # lane tile: pad the two-hot K dimension to a multiple of this

_VMEM = pl.BlockSpec(memory_space=pltpu.MemorySpace.VMEM)
_SMEM = pl.BlockSpec(memory_space=pltpu.MemorySpace.SMEM)


def _round_up(x, m):
    return ((x + m - 1) // m) * m


# ----------------------------------------------------------------------------
# In-kernel core: fused embedding + input projection (one matmul), fused
# bidirectional LSTM recurrence (one matmul per step), avg-pool over time.
# ----------------------------------------------------------------------------
def _bilstm_avgpool(tok_ref, emb_proj_ref, whh_ref, b_ref, gx_ref,
                    *, seq_len, rows_pad, hidden):
    T, NP, H = seq_len, rows_pad, hidden
    KPAD = emb_proj_ref.shape[0]                    # 128-aligned two-hot width

    # Embedding lookup + input projection for BOTH directions in one MXU push.
    # Row q = t*NP + r.  tok[:, 0] is the forward token id (< V), tok[:, 1] is
    # the time-reversed backward token id already offset by +V on the host.
    # Gate-column layout of the (.., 8H) result:
    # [i_f i_b | f_f f_b | o_f o_b | g_f g_b]  (each gate group is 2H lanes).
    col = lax.broadcasted_iota(jnp.int32, (T * NP, KPAD), 1)
    tok = tok_ref[...]                              # (T*NP, 2) int32
    hot = jnp.logical_or(col == tok[:, 0:1], col == tok[:, 1:2])
    # hot is exactly 0/1 -> bf16 cast is lossless; accumulate in f32.
    gx_ref[...] = jnp.dot(hot.astype(jnp.bfloat16), emb_proj_ref[...],
                          preferred_element_type=jnp.float32) + b_ref[...]

    whh = whh_ref[...]                              # (2H, 8H) bf16 block-diagonal
    h = jnp.zeros((NP, 2 * H), jnp.float32)         # [h_fwd | h_bwd]
    c = jnp.zeros((NP, 2 * H), jnp.float32)         # [c_fwd | c_bwd]
    acc = jnp.zeros((NP, 2 * H), jnp.float32)

    for t in range(T):                              # static unroll (T = 8)
        # one recurrence matmul per step drives all 8 gates of both directions
        g = gx_ref[t * NP:(t + 1) * NP, :] + jnp.dot(
            h.astype(jnp.bfloat16), whh, preferred_element_type=jnp.float32)
        s = jax.nn.sigmoid(g[:, 0:6 * H])           # one 192-lane sigmoid: i,f,o
        i_ = s[:, 0 * H:2 * H]
        f_ = s[:, 2 * H:4 * H]
        o_ = s[:, 4 * H:6 * H]
        g_ = jnp.tanh(g[:, 6 * H:8 * H])            # one 64-lane tanh: g
        c = f_ * c + i_ * g_
        h = o_ * jnp.tanh(c)
        acc = acc + h                               # running time-sum

    # AvgPool1d(max_length) over the (B, T, 2H) bi-LSTM output.
    return acc * jnp.float32(1.0 / T)               # (NP, 2H)


def _encode_kernel(tok_ref, emb_proj_ref, whh_ref, b_ref, o_ref, gx_ref,
                   *, seq_len, rows_pad, hidden):
    # Write the full padded lane-dense block; slice [0:B] in the JAX wrapper.
    o_ref[...] = _bilstm_avgpool(tok_ref, emb_proj_ref, whh_ref, b_ref, gx_ref,
                                 seq_len=seq_len, rows_pad=rows_pad,
                                 hidden=hidden)


def _triplet_kernel(tok_ref, emb_proj_ref, whh_ref, b_ref, o_ref, gx_ref,
                    *, seq_len, rows_pad, hidden, batch):
    pooled = _bilstm_avgpool(tok_ref, emb_proj_ref, whh_ref, b_ref, gx_ref,
                             seq_len=seq_len, rows_pad=rows_pad, hidden=hidden)
    B = batch

    def normalize(v):  # torch.nn.functional.normalize(dim=-1)
        ss = jnp.sum(v * v, axis=-1, keepdims=True)
        return v * lax.rsqrt(jnp.maximum(ss, jnp.float32(1e-24)))

    a = normalize(pooled[0 * B:1 * B, :])
    p = normalize(pooled[1 * B:2 * B, :])
    n = normalize(pooled[2 * B:3 * B, :])
    ap = 1.0 - jnp.sum(a * p, axis=-1, keepdims=True)    # cosine distance (B, 1)
    an = 1.0 - jnp.sum(a * n, axis=-1, keepdims=True)
    diff = ap - an + jnp.float32(0.1)
    mask = (diff >= 0.0).astype(jnp.float32)              # torch diff.ge(0)
    # torch.mean(diff[diff >= 0]) == sum(diff*mask)/sum(mask) (NaN if empty, as torch)
    o_ref[0, 0] = jnp.sum(diff * mask) / jnp.sum(mask)


# ----------------------------------------------------------------------------
# Wrappers (one pallas_call per forward).  NP (the kernel M dim) scales in
# multiples of 8 with the number of sentences packed per call, so larger
# batches / many triplets per call fill the MXU M dimension for free.
# ----------------------------------------------------------------------------
def _prep_tokens(sentences, rows_pad, v_rows):
    """sentences: list of (B, T) int32 -> (T*rows_pad, 2) [fwd | bwd+V] tokens."""
    toks = jnp.stack(sentences, axis=0).astype(jnp.int32)      # (S, B, T)
    S, B, T = toks.shape
    toks = jnp.transpose(toks, (2, 0, 1)).reshape(T, S * B)    # time-major rows
    toks = jnp.pad(toks, ((0, 0), (0, rows_pad - S * B)))      # pad rows -> token 0
    tok_f = toks.reshape(T * rows_pad, 1)
    tok_b = (toks[::-1, :] + v_rows).reshape(T * rows_pad, 1)  # time-reversed, +V
    return jnp.concatenate([tok_f, tok_b], axis=1)             # (T*NP, 2)


def sentence_encode(params, tokens):
    """tokens (B, T) int32 -> pooled sentence vectors (B, 2H) float32."""
    B, T = tokens.shape
    H = params["hidden"]
    NP = max(_SUB, _round_up(B, _SUB))
    tok = _prep_tokens([tokens], NP, params["v_rows"])
    kern = functools.partial(_encode_kernel, seq_len=T, rows_pad=NP, hidden=H)
    pooled = pl.pallas_call(
        kern,
        out_shape=jax.ShapeDtypeStruct((NP, 2 * H), jnp.float32),
        in_specs=[_VMEM] * 4,
        out_specs=_VMEM,
        scratch_shapes=[pltpu.VMEM((T * NP, 8 * H), jnp.float32)],
    )(tok, params["emb_proj"], params["whh_fused"], params["b_fused"])
    return pooled[:B, :]


def triplet_forward(params, s1, s2, s3):
    """Full triplet forward (3 encodes + loss) in ONE kernel -> scalar loss."""
    B, T = s1.shape
    H = params["hidden"]
    NP = max(_SUB, _round_up(3 * B, _SUB))
    tok = _prep_tokens([s1, s2, s3], NP, params["v_rows"])
    kern = functools.partial(_triplet_kernel, seq_len=T, rows_pad=NP,
                             hidden=H, batch=B)
    out = pl.pallas_call(
        kern,
        out_shape=jax.ShapeDtypeStruct((1, 1), jnp.float32),
        in_specs=[_VMEM] * 4,
        out_specs=_SMEM,
        scratch_shapes=[pltpu.VMEM((T * NP, 8 * H), jnp.float32)],
    )(tok, params["emb_proj"], params["whh_fused"], params["b_fused"])
    return out[0, 0]


def see_network_forward(params, s1, s2=None, s3=None):
    """Mirrors SeeNetWork.forward (dropout is identity in eval mode)."""
    if s2 is not None:
        return triplet_forward(params, s1, s2, s3)
    return sentence_encode(params, s1)


# ----------------------------------------------------------------------------
# Parameter setup: synthetic PyTorch-layout LSTM/embedding params, then fused
# into the MXU-friendly layouts the kernel consumes (done once at init).
# ----------------------------------------------------------------------------
def init_params(key, hidden=HIDDEN, vocab=VOCAB):
    H = hidden
    V = vocab + 1
    KPAD = _round_up(2 * V, _LANE)                 # two-hot K padded to 128-aligned
    ks = jax.random.split(key, 9)
    scale = 1.0 / jnp.sqrt(jnp.float32(H))

    emb = jax.random.normal(ks[0], (V, H), jnp.float32) * 0.1
    emb = emb.at[0].set(0.0)                       # padding_idx = 0

    def u(k, shape):
        return jax.random.uniform(k, shape, jnp.float32, -scale, scale)

    # PyTorch LSTM gate order in weight rows is [i, f, g, o].
    wih_f, whh_f = u(ks[1], (4 * H, H)), u(ks[2], (4 * H, H))
    b_f = (u(ks[3], (4 * H,)) + u(ks[4], (4 * H,))).reshape(1, 4 * H)   # b_ih + b_hh
    wih_b, whh_b = u(ks[5], (4 * H, H)), u(ks[6], (4 * H, H))
    b_b = (u(ks[7], (4 * H,)) + u(ks[8], (4 * H,))).reshape(1, 4 * H)

    # Fuse: embedding pre-projected through W_ih (gather == one/two-hot matmul, so
    # this is exact up to the bf16 cast), both directions packed into one
    # (KPAD, 8H) table (rows [0,V)=fwd, [V,2V)=bwd, rest zero); W_hh packed
    # block-diagonally into (2H, 8H).  Gate column groups are packed in the order
    # i, f, o, g (torch indices 0, 1, 3, 2) so the kernel applies one contiguous
    # 6H-lane sigmoid and one 2H-lane tanh.  Within a group: fwd then bwd.
    proj_f = emb @ wih_f.T                         # (V, 4H)
    proj_b = emb @ wih_b.T
    emb_proj = jnp.zeros((KPAD, 8 * H), jnp.float32)
    whh_fused = jnp.zeros((2 * H, 8 * H), jnp.float32)
    b_fused = jnp.zeros((1, 8 * H), jnp.float32)
    for pos, k in enumerate((0, 1, 3, 2)):         # packed order i, f, o, g
        cf, cb = 2 * pos * H, 2 * pos * H + H
        emb_proj = emb_proj.at[:V, cf:cf + H].set(proj_f[:, k * H:(k + 1) * H])
        emb_proj = emb_proj.at[V:2 * V, cb:cb + H].set(proj_b[:, k * H:(k + 1) * H])
        whh_fused = whh_fused.at[:H, cf:cf + H].set(whh_f[k * H:(k + 1) * H, :].T)
        whh_fused = whh_fused.at[H:, cb:cb + H].set(whh_b[k * H:(k + 1) * H, :].T)
        b_fused = b_fused.at[:, cf:cf + H].set(b_f[:, k * H:(k + 1) * H])
        b_fused = b_fused.at[:, cb:cb + H].set(b_b[:, k * H:(k + 1) * H])

    return {"hidden": H, "v_rows": V,
            "emb_proj": emb_proj.astype(jnp.bfloat16),     # bf16 MXU operands,
            "whh_fused": whh_fused.astype(jnp.bfloat16),   # f32 accumulation
            "b_fused": b_fused}


if __name__ == "__main__":
    key = jax.random.PRNGKey(0)
    pkey, k1, k2, k3 = jax.random.split(key, 4)
    params = init_params(pkey)

    s1 = jax.random.randint(k1, (BATCH, MAX_LEN), 1, VOCAB + 1, dtype=jnp.int32)
    s2 = jax.random.randint(k2, (BATCH, MAX_LEN), 1, VOCAB + 1, dtype=jnp.int32)
    s3 = jax.random.randint(k3, (BATCH, MAX_LEN), 1, VOCAB + 1, dtype=jnp.int32)

    # triplet-loss path (s2, s3 provided) -> scalar loss, single pallas_call
    loss = see_network_forward(params, s1, s2, s3)
    loss = jax.block_until_ready(loss)

    # single-sentence encoding path -> (B, 2H)
    vec = see_network_forward(params, s1)
    vec = jax.block_until_ready(vec)

    assert vec.shape == (BATCH, 2 * HIDDEN)
    assert loss.shape == ()
    print("KERNEL_OK")
</pallas_src>

<mosaic_0001>
module attributes {stable_mosaic.version = 11 : i64} {
  func.func @_triplet_kernel(%arg0: memref<64x2xi32, #tpu.memory_space<vmem>>, %arg1: memref<128x256xbf16, #tpu.memory_space<vmem>>, %arg2: memref<64x256xbf16, #tpu.memory_space<vmem>>, %arg3: memref<1x256xf32, #tpu.memory_space<vmem>>, %arg4: memref<1x1xf32, #tpu.memory_space<smem>>, %arg5: memref<64x256xf32, #tpu.memory_space<vmem>>) attributes {dimension_semantics = [], scalar_prefetch = 0 : i64, scratch_operands = 1 : i64, tpu.core_type = #tpu.core_type<tc>} {
    %0 = tpu.iota {dimensions = array<i32: 1>} : vector<64x128xi32>
    %c0 = arith.constant 0 : index
    %c0_0 = arith.constant 0 : index
    %1 = vector.load %arg0[%c0, %c0_0] : memref<64x2xi32, #tpu.memory_space<vmem>>, vector<64x2xi32>
    %2 = vector.extract_strided_slice %1 {offsets = [0, 0], sizes = [64, 1], strides = [1, 1]} : vector<64x2xi32> to vector<64x1xi32>
    %3 = vector.broadcast %2 : vector<64x1xi32> to vector<64x128xi32>
    %4 = arith.cmpi eq, %0, %3 : vector<64x128xi32>
    %5 = vector.extract_strided_slice %1 {offsets = [0, 1], sizes = [64, 1], strides = [1, 1]} : vector<64x2xi32> to vector<64x1xi32>
    %6 = vector.broadcast %5 : vector<64x1xi32> to vector<64x128xi32>
    %7 = arith.cmpi eq, %0, %6 : vector<64x128xi32>
    %8 = arith.ori %4, %7 : vector<64x128xi1>
    %9 = arith.extui %8 : vector<64x128xi1> to vector<64x128xi32>
    %10 = arith.sitofp %9 : vector<64x128xi32> to vector<64x128xf32>
    %11 = arith.truncf %10 : vector<64x128xf32> to vector<64x128xbf16>
    %c0_1 = arith.constant 0 : index
    %c0_2 = arith.constant 0 : index
    %12 = vector.load %arg1[%c0_1, %c0_2] : memref<128x256xbf16, #tpu.memory_space<vmem>>, vector<128x256xbf16>
    %cst = arith.constant dense<0.000000e+00> : vector<64x256xf32>
    %13 = tpu.matmul %11, %12, %cst {dimension_numbers = #tpu.dot_dimension_numbers<[1], [0], [0], [1], [0, 0, 1, 1], [], []>} : vector<64x128xbf16>, vector<128x256xbf16>, vector<64x256xf32> -> vector<64x256xf32>
    %c0_3 = arith.constant 0 : index
    %c0_4 = arith.constant 0 : index
    %14 = vector.load %arg3[%c0_3, %c0_4] : memref<1x256xf32, #tpu.memory_space<vmem>>, vector<1x256xf32>
    %15 = vector.broadcast %14 : vector<1x256xf32> to vector<64x256xf32>
    %16 = arith.addf %13, %15 : vector<64x256xf32>
    %c0_5 = arith.constant 0 : index
    %c0_6 = arith.constant 0 : index
    %17 = vector.load %arg5[%c0_5, %c0_6] : memref<64x256xf32, #tpu.memory_space<vmem>>, vector<64x256xf32>
    tpu.vector_store %arg5[%c0_5, %c0_6], %16 {strides = array<i32>} : memref<64x256xf32, #tpu.memory_space<vmem>>, vector<64x256xf32>,
    %c0_7 = arith.constant 0 : index
    %c0_8 = arith.constant 0 : index
    %18 = vector.load %arg2[%c0_7, %c0_8] : memref<64x256xbf16, #tpu.memory_space<vmem>>, vector<64x256xbf16>
    %cst_9 = arith.constant 0.000000e+00 : f32
    %19 = vector.broadcast %cst_9 : f32 to vector<8x64xf32>
    %cst_10 = arith.constant 0.000000e+00 : f32
    %20 = vector.broadcast %cst_10 : f32 to vector<8x64xf32>
    %cst_11 = arith.constant 0.000000e+00 : f32
    %21 = vector.broadcast %cst_11 : f32 to vector<8x64xf32>
    %c0_12 = arith.constant 0 : index
    %c0_13 = arith.constant 0 : index
    %22 = vector.load %arg5[%c0_12, %c0_13] : memref<64x256xf32, #tpu.memory_space<vmem>>, vector<8x256xf32>
    %23 = arith.truncf %19 : vector<8x64xf32> to vector<8x64xbf16>
    %cst_14 = arith.constant dense<0.000000e+00> : vector<8x256xf32>
    %24 = tpu.matmul %23, %18, %cst_14 {dimension_numbers = #tpu.dot_dimension_numbers<[1], [0], [0], [1], [0, 0, 1, 1], [], []>} : vector<8x64xbf16>, vector<64x256xbf16>, vector<8x256xf32> -> vector<8x256xf32>
    %25 = arith.addf %22, %24 : vector<8x256xf32>
    %26 = vector.extract_strided_slice %25 {offsets = [0, 0], sizes = [8, 192], strides = [1, 1]} : vector<8x256xf32> to vector<8x192xf32>
    %27 = arith.negf %26 : vector<8x192xf32>
    %28 = math.exp %27 : vector<8x192xf32>
    %cst_15 = arith.constant 1.000000e+00 : f32
    %29 = vector.broadcast %cst_15 : f32 to vector<8x192xf32>
    %30 = arith.addf %29, %28 : vector<8x192xf32>
    %31 = arith.divf %29, %30 : vector<8x192xf32>
    %32 = vector.extract_strided_slice %31 {offsets = [0, 0], sizes = [8, 64], strides = [1, 1]} : vector<8x192xf32> to vector<8x64xf32>
    %33 = vector.extract_strided_slice %31 {offsets = [0, 64], sizes = [8, 64], strides = [1, 1]} : vector<8x192xf32> to vector<8x64xf32>
    %34 = vector.extract_strided_slice %31 {offsets = [0, 128], sizes = [8, 64], strides = [1, 1]} : vector<8x192xf32> to vector<8x64xf32>
    %35 = vector.extract_strided_slice %25 {offsets = [0, 192], sizes = [8, 64], strides = [1, 1]} : vector<8x256xf32> to vector<8x64xf32>
    %36 = math.tanh %35 : vector<8x64xf32>
    %37 = arith.mulf %33, %20 : vector<8x64xf32>
    %38 = arith.mulf %32, %36 : vector<8x64xf32>
    %39 = arith.addf %37, %38 : vector<8x64xf32>
    %40 = math.tanh %39 : vector<8x64xf32>
    %41 = arith.mulf %34, %40 : vector<8x64xf32>
    %42 = arith.addf %21, %41 : vector<8x64xf32>
    %c8 = arith.constant 8 : index
    %c0_16 = arith.constant 0 : index
    %43 = vector.load %arg5[%c8, %c0_16] : memref<64x256xf32, #tpu.memory_space<vmem>>, vector<8x256xf32>
    %44 = arith.truncf %41 : vector<8x64xf32> to vector<8x64xbf16>
    %cst_17 = arith.constant dense<0.000000e+00> : vector<8x256xf32>
    %45 = tpu.matmul %44, %18, %cst_17 {dimension_numbers = #tpu.dot_dimension_numbers<[1], [0], [0], [1], [0, 0, 1, 1], [], []>} : vector<8x64xbf16>, vector<64x256xbf16>, vector<8x256xf32> -> vector<8x256xf32>
    %46 = arith.addf %43, %45 : vector<8x256xf32>
    %47 = vector.extract_strided_slice %46 {offsets = [0, 0], sizes = [8, 192], strides = [1, 1]} : vector<8x256xf32> to vector<8x192xf32>
    %48 = arith.negf %47 : vector<8x192xf32>
    %49 = math.exp %48 : vector<8x192xf32>
    %cst_18 = arith.constant 1.000000e+00 : f32
    %50 = vector.broadcast %cst_18 : f32 to vector<8x192xf32>
    %51 = arith.addf %50, %49 : vector<8x192xf32>
    %52 = arith.divf %50, %51 : vector<8x192xf32>
    %53 = vector.extract_strided_slice %52 {offsets = [0, 0], sizes = [8, 64], strides = [1, 1]} : vector<8x192xf32> to vector<8x64xf32>
    %54 = vector.extract_strided_slice %52 {offsets = [0, 64], sizes = [8, 64], strides = [1, 1]} : vector<8x192xf32> to vector<8x64xf32>
    %55 = vector.extract_strided_slice %52 {offsets = [0, 128], sizes = [8, 64], strides = [1, 1]} : vector<8x192xf32> to vector<8x64xf32>
    %56 = vector.extract_strided_slice %46 {offsets = [0, 192], sizes = [8, 64], strides = [1, 1]} : vector<8x256xf32> to vector<8x64xf32>
    %57 = math.tanh %56 : vector<8x64xf32>
    %58 = arith.mulf %54, %39 : vector<8x64xf32>
    %59 = arith.mulf %53, %57 : vector<8x64xf32>
    %60 = arith.addf %58, %59 : vector<8x64xf32>
    %61 = math.tanh %60 : vector<8x64xf32>
    %62 = arith.mulf %55, %61 : vector<8x64xf32>
    %63 = arith.addf %42, %62 : vector<8x64xf32>
    %c16 = arith.constant 16 : index
    %c0_19 = arith.constant 0 : index
    %64 = vector.load %arg5[%c16, %c0_19] : memref<64x256xf32, #tpu.memory_space<vmem>>, vector<8x256xf32>
    %65 = arith.truncf %62 : vector<8x64xf32> to vector<8x64xbf16>
    %cst_20 = arith.constant dense<0.000000e+00> : vector<8x256xf32>
    %66 = tpu.matmul %65, %18, %cst_20 {dimension_numbers = #tpu.dot_dimension_numbers<[1], [0], [0], [1], [0, 0, 1, 1], [], []>} : vector<8x64xbf16>, vector<64x256xbf16>, vector<8x256xf32> -> vector<8x256xf32>
    %67 = arith.addf %64, %66 : vector<8x256xf32>
    %68 = vector.extract_strided_slice %67 {offsets = [0, 0], sizes = [8, 192], strides = [1, 1]} : vector<8x256xf32> to vector<8x192xf32>
    %69 = arith.negf %68 : vector<8x192xf32>
    %70 = math.exp %69 : vector<8x192xf32>
    %cst_21 = arith.constant 1.000000e+00 : f32
    %71 = vector.broadcast %cst_21 : f32 to vector<8x192xf32>
    %72 = arith.addf %71, %70 : vector<8x192xf32>
    %73 = arith.divf %71, %72 : vector<8x192xf32>
    %74 = vector.extract_strided_slice %73 {offsets = [0, 0], sizes = [8, 64], strides = [1, 1]} : vector<8x192xf32> to vector<8x64xf32>
    %75 = vector.extract_strided_slice %73 {offsets = [0, 64], sizes = [8, 64], strides = [1, 1]} : vector<8x192xf32> to vector<8x64xf32>
    %76 = vector.extract_strided_slice %73 {offsets = [0, 128], sizes = [8, 64], strides = [1, 1]} : vector<8x192xf32> to vector<8x64xf32>
    %77 = vector.extract_strided_slice %67 {offsets = [0, 192], sizes = [8, 64], strides = [1, 1]} : vector<8x256xf32> to vector<8x64xf32>
    %78 = math.tanh %77 : vector<8x64xf32>
    %79 = arith.mulf %75, %60 : vector<8x64xf32>
    %80 = arith.mulf %74, %78 : vector<8x64xf32>
    %81 = arith.addf %79, %80 : vector<8x64xf32>
    %82 = math.tanh %81 : vector<8x64xf32>
    %83 = arith.mulf %76, %82 : vector<8x64xf32>
    %84 = arith.addf %63, %83 : vector<8x64xf32>
    %c24 = arith.constant 24 : index
    %c0_22 = arith.constant 0 : index
    %85 = vector.load %arg5[%c24, %c0_22] : memref<64x256xf32, #tpu.memory_space<vmem>>, vector<8x256xf32>
    %86 = arith.truncf %83 : vector<8x64xf32> to vector<8x64xbf16>
    %cst_23 = arith.constant dense<0.000000e+00> : vector<8x256xf32>
    %87 = tpu.matmul %86, %18, %cst_23 {dimension_numbers = #tpu.dot_dimension_numbers<[1], [0], [0], [1], [0, 0, 1, 1], [], []>} : vector<8x64xbf16>, vector<64x256xbf16>, vector<8x256xf32> -> vector<8x256xf32>
    %88 = arith.addf %85, %87 : vector<8x256xf32>
    %89 = vector.extract_strided_slice %88 {offsets = [0, 0], sizes = [8, 192], strides = [1, 1]} : vector<8x256xf32> to vector<8x192xf32>
    %90 = arith.negf %89 : vector<8x192xf32>
    %91 = math.exp %90 : vector<8x192xf32>
    %cst_24 = arith.constant 1.000000e+00 : f32
    %92 = vector.broadcast %cst_24 : f32 to vector<8x192xf32>
    %93 = arith.addf %92, %91 : vector<8x192xf32>
    %94 = arith.divf %92, %93 : vector<8x192xf32>
    %95 = vector.extract_strided_slice %94 {offsets = [0, 0], sizes = [8, 64], strides = [1, 1]} : vector<8x192xf32> to vector<8x64xf32>
    %96 = vector.extract_strided_slice %94 {offsets = [0, 64], sizes = [8, 64], strides = [1, 1]} : vector<8x192xf32> to vector<8x64xf32>
    %97 = vector.extract_strided_slice %94 {offsets = [0, 128], sizes = [8, 64], strides = [1, 1]} : vector<8x192xf32> to vector<8x64xf32>
    %98 = vector.extract_strided_slice %88 {offsets = [0, 192], sizes = [8, 64], strides = [1, 1]} : vector<8x256xf32> to vector<8x64xf32>
    %99 = math.tanh %98 : vector<8x64xf32>
    %100 = arith.mulf %96, %81 : vector<8x64xf32>
    %101 = arith.mulf %95, %99 : vector<8x64xf32>
    %102 = arith.addf %100, %101 : vector<8x64xf32>
    %103 = math.tanh %102 : vector<8x64xf32>
    %104 = arith.mulf %97, %103 : vector<8x64xf32>
    %105 = arith.addf %84, %104 : vector<8x64xf32>
    %c32 = arith.constant 32 : index
    %c0_25 = arith.constant 0 : index
    %106 = vector.load %arg5[%c32, %c0_25] : memref<64x256xf32, #tpu.memory_space<vmem>>, vector<8x256xf32>
    %107 = arith.truncf %104 : vector<8x64xf32> to vector<8x64xbf16>
    %cst_26 = arith.constant dense<0.000000e+00> : vector<8x256xf32>
    %108 = tpu.matmul %107, %18, %cst_26 {dimension_numbers = #tpu.dot_dimension_numbers<[1], [0], [0], [1], [0, 0, 1, 1], [], []>} : vector<8x64xbf16>, vector<64x256xbf16>, vector<8x256xf32> -> vector<8x256xf32>
    %109 = arith.addf %106, %108 : vector<8x256xf32>
    %110 = vector.extract_strided_slice %109 {offsets = [0, 0], sizes = [8, 192], strides = [1, 1]} : vector<8x256xf32> to vector<8x192xf32>
    %111 = arith.negf %110 : vector<8x192xf32>
    %112 = math.exp %111 : vector<8x192xf32>
    %cst_27 = arith.constant 1.000000e+00 : f32
    %113 = vector.broadcast %cst_27 : f32 to vector<8x192xf32>
    %114 = arith.addf %113, %112 : vector<8x192xf32>
    %115 = arith.divf %113, %114 : vector<8x192xf32>
    %116 = vector.extract_strided_slice %115 {offsets = [0, 0], sizes = [8, 64], strides = [1, 1]} : vector<8x192xf32> to vector<8x64xf32>
    %117 = vector.extract_strided_slice %115 {offsets = [0, 64], sizes = [8, 64], strides = [1, 1]} : vector<8x192xf32> to vector<8x64xf32>
    %118 = vector.extract_strided_slice %115 {offsets = [0, 128], sizes = [8, 64], strides = [1, 1]} : vector<8x192xf32> to vector<8x64xf32>
    %119 = vector.extract_strided_slice %109 {offsets = [0, 192], sizes = [8, 64], strides = [1, 1]} : vector<8x256xf32> to vector<8x64xf32>
    %120 = math.tanh %119 : vector<8x64xf32>
    %121 = arith.mulf %117, %102 : vector<8x64xf32>
    %122 = arith.mulf %116, %120 : vector<8x64xf32>
    %123 = arith.addf %121, %122 : vector<8x64xf32>
    %124 = math.tanh %123 : vector<8x64xf32>
    %125 = arith.mulf %118, %124 : vector<8x64xf32>
    %126 = arith.addf %105, %125 : vector<8x64xf32>
    %c40 = arith.constant 40 : index
    %c0_28 = arith.constant 0 : index
    %127 = vector.load %arg5[%c40, %c0_28] : memref<64x256xf32, #tpu.memory_space<vmem>>, vector<8x256xf32>
    %128 = arith.truncf %125 : vector<8x64xf32> to vector<8x64xbf16>
    %cst_29 = arith.constant dense<0.000000e+00> : vector<8x256xf32>
    %129 = tpu.matmul %128, %18, %cst_29 {dimension_numbers = #tpu.dot_dimension_numbers<[1], [0], [0], [1], [0, 0, 1, 1], [], []>} : vector<8x64xbf16>, vector<64x256xbf16>, vector<8x256xf32> -> vector<8x256xf32>
    %130 = arith.addf %127, %129 : vector<8x256xf32>
    %131 = vector.extract_strided_slice %130 {offsets = [0, 0], sizes = [8, 192], strides = [1, 1]} : vector<8x256xf32> to vector<8x192xf32>
    %132 = arith.negf %131 : vector<8x192xf32>
    %133 = math.exp %132 : vector<8x192xf32>
    %cst_30 = arith.constant 1.000000e+00 : f32
    %134 = vector.broadcast %cst_30 : f32 to vector<8x192xf32>
    %135 = arith.addf %134, %133 : vector<8x192xf32>
    %136 = arith.divf %134, %135 : vector<8x192xf32>
    %137 = vector.extract_strided_slice %136 {offsets = [0, 0], sizes = [8, 64], strides = [1, 1]} : vector<8x192xf32> to vector<8x64xf32>
    %138 = vector.extract_strided_slice %136 {offsets = [0, 64], sizes = [8, 64], strides = [1, 1]} : vector<8x192xf32> to vector<8x64xf32>
    %139 = vector.extract_strided_slice %136 {offsets = [0, 128], sizes = [8, 64], strides = [1, 1]} : vector<8x192xf32> to vector<8x64xf32>
    %140 = vector.extract_strided_slice %130 {offsets = [0, 192], sizes = [8, 64], strides = [1, 1]} : vector<8x256xf32> to vector<8x64xf32>
    %141 = math.tanh %140 : vector<8x64xf32>
    %142 = arith.mulf %138, %123 : vector<8x64xf32>
    %143 = arith.mulf %137, %141 : vector<8x64xf32>
    %144 = arith.addf %142, %143 : vector<8x64xf32>
    %145 = math.tanh %144 : vector<8x64xf32>
    %146 = arith.mulf %139, %145 : vector<8x64xf32>
    %147 = arith.addf %126, %146 : vector<8x64xf32>
    %c48 = arith.constant 48 : index
    %c0_31 = arith.constant 0 : index
    %148 = vector.load %arg5[%c48, %c0_31] : memref<64x256xf32, #tpu.memory_space<vmem>>, vector<8x256xf32>
    %149 = arith.truncf %146 : vector<8x64xf32> to vector<8x64xbf16>
    %cst_32 = arith.constant dense<0.000000e+00> : vector<8x256xf32>
    %150 = tpu.matmul %149, %18, %cst_32 {dimension_numbers = #tpu.dot_dimension_numbers<[1], [0], [0], [1], [0, 0, 1, 1], [], []>} : vector<8x64xbf16>, vector<64x256xbf16>, vector<8x256xf32> -> vector<8x256xf32>
    %151 = arith.addf %148, %150 : vector<8x256xf32>
    %152 = vector.extract_strided_slice %151 {offsets = [0, 0], sizes = [8, 192], strides = [1, 1]} : vector<8x256xf32> to vector<8x192xf32>
    %153 = arith.negf %152 : vector<8x192xf32>
    %154 = math.exp %153 : vector<8x192xf32>
    %cst_33 = arith.constant 1.000000e+00 : f32
    %155 = vector.broadcast %cst_33 : f32 to vector<8x192xf32>
    %156 = arith.addf %155, %154 : vector<8x192xf32>
    %157 = arith.divf %155, %156 : vector<8x192xf32>
    %158 = vector.extract_strided_slice %157 {offsets = [0, 0], sizes = [8, 64], strides = [1, 1]} : vector<8x192xf32> to vector<8x64xf32>
    %159 = vector.extract_strided_slice %157 {offsets = [0, 64], sizes = [8, 64], strides = [1, 1]} : vector<8x192xf32> to vector<8x64xf32>
    %160 = vector.extract_strided_slice %157 {offsets = [0, 128], sizes = [8, 64], strides = [1, 1]} : vector<8x192xf32> to vector<8x64xf32>
    %161 = vector.extract_strided_slice %151 {offsets = [0, 192], sizes = [8, 64], strides = [1, 1]} : vector<8x256xf32> to vector<8x64xf32>
    %162 = math.tanh %161 : vector<8x64xf32>
    %163 = arith.mulf %159, %144 : vector<8x64xf32>
    %164 = arith.mulf %158, %162 : vector<8x64xf32>
    %165 = arith.addf %163, %164 : vector<8x64xf32>
    %166 = math.tanh %165 : vector<8x64xf32>
    %167 = arith.mulf %160, %166 : vector<8x64xf32>
    %168 = arith.addf %147, %167 : vector<8x64xf32>
    %c56 = arith.constant 56 : index
    %c0_34 = arith.constant 0 : index
    %169 = vector.load %arg5[%c56, %c0_34] : memref<64x256xf32, #tpu.memory_space<vmem>>, vector<8x256xf32>
    %170 = arith.truncf %167 : vector<8x64xf32> to vector<8x64xbf16>
    %cst_35 = arith.constant dense<0.000000e+00> : vector<8x256xf32>
    %171 = tpu.matmul %170, %18, %cst_35 {dimension_numbers = #tpu.dot_dimension_numbers<[1], [0], [0], [1], [0, 0, 1, 1], [], []>} : vector<8x64xbf16>, vector<64x256xbf16>, vector<8x256xf32> -> vector<8x256xf32>
    %172 = arith.addf %169, %171 : vector<8x256xf32>
    %173 = vector.extract_strided_slice %172 {offsets = [0, 0], sizes = [8, 192], strides = [1, 1]} : vector<8x256xf32> to vector<8x192xf32>
    %174 = arith.negf %173 : vector<8x192xf32>
    %175 = math.exp %174 : vector<8x192xf32>
    %cst_36 = arith.constant 1.000000e+00 : f32
    %176 = vector.broadcast %cst_36 : f32 to vector<8x192xf32>
    %177 = arith.addf %176, %175 : vector<8x192xf32>
    %178 = arith.divf %176, %177 : vector<8x192xf32>
    %179 = vector.extract_strided_slice %178 {offsets = [0, 0], sizes = [8, 64], strides = [1, 1]} : vector<8x192xf32> to vector<8x64xf32>
    %180 = vector.extract_strided_slice %178 {offsets = [0, 64], sizes = [8, 64], strides = [1, 1]} : vector<8x192xf32> to vector<8x64xf32>
    %181 = vector.extract_strided_slice %178 {offsets = [0, 128], sizes = [8, 64], strides = [1, 1]} : vector<8x192xf32> to vector<8x64xf32>
    %182 = vector.extract_strided_slice %172 {offsets = [0, 192], sizes = [8, 64], strides = [1, 1]} : vector<8x256xf32> to vector<8x64xf32>
    %183 = math.tanh %182 : vector<8x64xf32>
    %184 = arith.mulf %180, %165 : vector<8x64xf32>
    %185 = arith.mulf %179, %183 : vector<8x64xf32>
    %186 = arith.addf %184, %185 : vector<8x64xf32>
    %187 = math.tanh %186 : vector<8x64xf32>
    %188 = arith.mulf %181, %187 : vector<8x64xf32>
    %189 = arith.addf %168, %188 : vector<8x64xf32>
    %cst_37 = arith.constant 1.250000e-01 : f32
    %190 = vector.broadcast %cst_37 : f32 to vector<8x64xf32>
    %191 = arith.mulf %189, %190 : vector<8x64xf32>
    %192 = vector.extract_strided_slice %191 {offsets = [0, 0], sizes = [2, 64], strides = [1, 1]} : vector<8x64xf32> to vector<2x64xf32>
    %193 = arith.mulf %192, %192 : vector<2x64xf32>
    %cst_38 = arith.constant dense<0.000000e+00> : vector<2xf32>
    %194 = vector.multi_reduction <add>, %193, %cst_38 [1] : vector<2x64xf32> to vector<2xf32>
    %195 = vector.shape_cast %194 : vector<2xf32> to vector<2x1xf32>
    %cst_39 = arith.constant 1.000000e-24 : f32
    %196 = vector.broadcast %cst_39 : f32 to vector<2x1xf32>
    %197 = arith.maximumf %195, %196 : vector<2x1xf32>
    %198 = math.rsqrt %197 : vector<2x1xf32>
    %199 = vector.broadcast %198 : vector<2x1xf32> to vector<2x64xf32>
    %200 = arith.mulf %192, %199 : vector<2x64xf32>
    %201 = vector.extract_strided_slice %191 {offsets = [2, 0], sizes = [2, 64], strides = [1, 1]} : vector<8x64xf32> to vector<2x64xf32>
    %202 = arith.mulf %201, %201 : vector<2x64xf32>
    %cst_40 = arith.constant dense<0.000000e+00> : vector<2xf32>
    %203 = vector.multi_reduction <add>, %202, %cst_40 [1] : vector<2x64xf32> to vector<2xf32>
    %204 = vector.shape_cast %203 : vector<2xf32> to vector<2x1xf32>
    %cst_41 = arith.constant 1.000000e-24 : f32
    %205 = vector.broadcast %cst_41 : f32 to vector<2x1xf32>
    %206 = arith.maximumf %204, %205 : vector<2x1xf32>
    %207 = math.rsqrt %206 : vector<2x1xf32>
    %208 = vector.broadcast %207 : vector<2x1xf32> to vector<2x64xf32>
    %209 = arith.mulf %201, %208 : vector<2x64xf32>
    %210 = vector.extract_strided_slice %191 {offsets = [4, 0], sizes = [2, 64], strides = [1, 1]} : vector<8x64xf32> to vector<2x64xf32>
    %211 = arith.mulf %210, %210 : vector<2x64xf32>
    %cst_42 = arith.constant dense<0.000000e+00> : vector<2xf32>
    %212 = vector.multi_reduction <add>, %211, %cst_42 [1] : vector<2x64xf32> to vector<2xf32>
    %213 = vector.shape_cast %212 : vector<2xf32> to vector<2x1xf32>
    %cst_43 = arith.constant 1.000000e-24 : f32
    %214 = vector.broadcast %cst_43 : f32 to vector<2x1xf32>
    %215 = arith.maximumf %213, %214 : vector<2x1xf32>
    %216 = math.rsqrt %215 : vector<2x1xf32>
    %217 = vector.broadcast %216 : vector<2x1xf32> to vector<2x64xf32>
    %218 = arith.mulf %210, %217 : vector<2x64xf32>
    %219 = arith.mulf %200, %209 : vector<2x64xf32>
    %cst_44 = arith.constant dense<0.000000e+00> : vector<2xf32>
    %220 = vector.multi_reduction <add>, %219, %cst_44 [1] : vector<2x64xf32> to vector<2xf32>
    %221 = vector.shape_cast %220 : vector<2xf32> to vector<2x1xf32>
    %cst_45 = arith.constant 1.000000e+00 : f32
    %222 = vector.broadcast %cst_45 : f32 to vector<2x1xf32>
    %223 = arith.subf %222, %221 : vector<2x1xf32>
    %224 = arith.mulf %200, %218 : vector<2x64xf32>
    %cst_46 = arith.constant dense<0.000000e+00> : vector<2xf32>
    %225 = vector.multi_reduction <add>, %224, %cst_46 [1] : vector<2x64xf32> to vector<2xf32>
    %226 = vector.shape_cast %225 : vector<2xf32> to vector<2x1xf32>
    %cst_47 = arith.constant 1.000000e+00 : f32
    %227 = vector.broadcast %cst_47 : f32 to vector<2x1xf32>
    %228 = arith.subf %227, %226 : vector<2x1xf32>
    %229 = arith.subf %223, %228 : vector<2x1xf32>
    %cst_48 = arith.constant 1.000000e-01 : f32
    %230 = vector.broadcast %cst_48 : f32 to vector<2x1xf32>
    %231 = arith.addf %229, %230 : vector<2x1xf32>
    %cst_49 = arith.constant 0.000000e+00 : f32
    %232 = vector.broadcast %cst_49 : f32 to vector<2x1xf32>
    %233 = arith.cmpf oge, %231, %232 : vector<2x1xf32>
    %234 = arith.extui %233 : vector<2x1xi1> to vector<2x1xi32>
    %235 = arith.sitofp %234 : vector<2x1xi32> to vector<2x1xf32>
    %236 = arith.mulf %231, %235 : vector<2x1xf32>
    %237 = vector.shape_cast %236 : vector<2x1xf32> to vector<1x2x1xf32>
    %cst_50 = arith.constant dense<0.000000e+00> : vector<1xf32>
    %238 = vector.multi_reduction <add>, %237, %cst_50 [1, 2] : vector<1x2x1xf32> to vector<1xf32>
    %239 = vector.shape_cast %238 : vector<1xf32> to vector<1x1x1xf32>
    %240 = vector.extract %239[0, 0, 0] : f32 from vector<1x1x1xf32>
    %241 = vector.shape_cast %235 : vector<2x1xf32> to vector<1x2x1xf32>
    %cst_51 = arith.constant dense<0.000000e+00> : vector<1xf32>
    %242 = vector.multi_reduction <add>, %241, %cst_51 [1, 2] : vector<1x2x1xf32> to vector<1xf32>
    %243 = vector.shape_cast %242 : vector<1xf32> to vector<1x1x1xf32>
    %244 = vector.extract %243[0, 0, 0] : f32 from vector<1x1x1xf32>
    %245 = arith.divf %240, %244 : f32
    %c0_52 = arith.constant 0 : index
    %c0_53 = arith.constant 0 : index
    %246 = memref.load %arg4[%c0_52, %c0_53] : memref<1x1xf32, #tpu.memory_space<smem>>
    memref.store %245, %arg4[%c0_52, %c0_53] : memref<1x1xf32, #tpu.memory_space<smem>>
    return
  }
}

</mosaic_0001>

<bundles_post_ra>
// kernel: tpu_custom_call.1
= control target key start
LH: loop header
LB: loop body
LE: loop exit
PB: predicated region body
PF: predicated region fallthrough
CT: control target
= control target key end

     0   :  { %9 = vsyncpa [#allocation4], 0  ;;  %s1675_s0 = inlined_call_operand.vmem [shape: s32[64,2], index: 0, kind: input, shape index: {}]   ;;  %s1676_s1 = inlined_call_operand.hbm [shape: bf16[128,256], index: 1, kind: input, shape index: {}]   ;;  %s1677_s2 = inlined_call_operand.vmem [shape: bf16[64,256], index: 2, kind: input, shape index: {}]   ;;  %s1678_s3 = inlined_call_operand.vmem [shape: f32[1,256], index: 3, kind: input, shape index: {}]   ;;  %s1679_s4 = inlined_call_operand.hbm [shape: f32[1,1], index: 4, kind: output, shape index: {}]  }
   0x1   :  { %10 = vsyncpa [#allocation5], 0  ;;  %s1368_s15 = smov [#allocation3]  }
   0x2   :  { %s18_s16 = sshll.u32 %s1368_s15, 4  ;;  %s19_s16 = int_to_ptr.vmem [resolvable:$true] %s18_s16 }
   0x3   :  { %s1344_s17 = scalar_lea.vmem %s19_s16, 2048  ;;  %p1349_p1 = scmp.lt.s32.totalorder %s19_s16, %s19_s16 }
   0x4   :  { %p1345_p0 = scmp.ne.s32.totalorder %s19_s16, %s1344_s17  ;;  %p1350_p2 = scmp.lt.s32.totalorder %s1344_s17, %s1344_s17 }
   0x6   :  { %p1351_p3 = por %p1350_p2, %p1349_p1 }
   0x8   :  { %p1352_p4 = pnand %p1351_p3, %p1345_p0 }
   0xa   :  { %1355 = shalt.err (!%p1352_p4)
}
   0xb   :  { %s1369_s18 = smov 128   ;;  %s1370_s19 = smov 8  }
   0xc   :  { %24 = dma.hbm_to_vmem [thread:$0]  %s1676_s1, 2048, %s19_s16, [#allocation4], %s1369_s18, %s1369_s18, %s1370_s19  }
   0xd   :  { %1364 = dma.done.wait [#allocation4], 2048  }
   0xe   :  { %1365 = vsyncadd [#allocation4], 4294965248  ;;  %v1371_v0 = vmov 1   ;;  %v1372_v1 = vmov 0   ;;  %v35_v2 = vld [vmem:[%s1675_s0] sm:$0xff]  ;;  %v36_v3 = vld [vmem:[%s1675_s0 + $0x8] sm:$0xff]  ;;  %v33_v28 = vlaneseq }
   0xf   :  { %1186 = vset.pattern.permute.xlu1 %v1371_v0  ;;  %1185 = vset.pattern.permute.xlu0 %v1372_v1  ;;  %v1196_v4 = vld [vmem:[#allocation3 + $0x74] ss:$8 sps:$4 sm:$0xff]   ;;  %v1198_v5 = vld [vmem:[#allocation3 + $0x70] ss:$8 sps:$4 sm:$0xff]   ;;  %v1199_v6 = vld [vmem:[#allocation3 + $0x64] ss:$8 sps:$4 sm:$0xff]  }
  0x10   :  { %418 = vmatprep.mubr.bf16.mxu1 %v1372_v1  ;;  %275 = vmatprep.mubr.bf16.mxu0 %v1372_v1  ;;  %v1201_v7 = vld [vmem:[#allocation3 + $0x60] ss:$8 sps:$4 sm:$0xff]   ;;  %v1202_v8 = vld [vmem:[#allocation3 + $0x54] ss:$8 sps:$4 sm:$0xff]   ;;  %v1423_v10 = vld [vmem:[%s1677_s2 + $0x30] ss:$8 sps:$4 sm:$0xff]  }
  0x11   :  { %76 = vperm.xlu1 %1186, %v35_v2   ;;  %44 = vperm.xlu0 %1185, %v35_v2   ;;  %v1418_v9 = vld [vmem:[%s1677_s2 + $0x34] ss:$8 sps:$4 sm:$0xff]   ;;  %v1204_v11 = vld [vmem:[#allocation3 + $0x50] ss:$8 sps:$4 sm:$0xff]   ;;  %v1205_v12 = vld [vmem:[#allocation3 + $0x44] ss:$8 sps:$4 sm:$0xff]  }
  0x12   :  { %243 = vmatprep.subr.bf16.mxu0 %v1196_v4  ;;  %394 = vmatprep.subr.bf16.mxu1 %v1418_v9  ;;  %v1430_v13 = vld [vmem:[%s1677_s2 + $0x24] ss:$8 sps:$4 sm:$0xff]   ;;  %v1435_v14 = vld [vmem:[%s1677_s2 + $0x20] ss:$8 sps:$4 sm:$0xff]   ;;  %v1442_v15 = vld [vmem:[%s1677_s2 + $0x14] ss:$8 sps:$4 sm:$0xff]  }
  0x13   :  { %244 = vmatpush1.bf16.msra.mxu0 %v1198_v5  ;;  %395 = vmatpush1.bf16.msra.mxu1 %v1423_v10  ;;  %v1209_v16 = vld [vmem:[#allocation3 + $0x40] ss:$8 sps:$4 sm:$0xff]   ;;  %v1211_v17 = vld [vmem:[#allocation3 + $0x34] ss:$8 sps:$4 sm:$0xff]   ;;  %v1448_v18 = vld [vmem:[%s1677_s2 + $0x10] ss:$8 sps:$4 sm:$0xff]  }
  0x14   :  { %245 = vmatprep.subr.bf16.mxu0 %v1199_v6  ;;  %396 = vmatprep.subr.bf16.mxu1 %v1430_v13  ;;  %v1454_v19 = vld [vmem:[%s1677_s2 + $0x4] ss:$8 sps:$4 sm:$0xff]   ;;  %v1215_v20 = vld [vmem:[#allocation3 + $0x30] ss:$8 sps:$4 sm:$0xff]   ;;  %v1460_v22 = vld [vmem:[%s1677_s2] ss:$8 sps:$4 sm:$0xff]  }
  0x15   :  { %79 = vperm.xlu1 %1186, %v36_v3   ;;  %47 = vperm.xlu0 %1185, %v36_v3   ;;  %v1217_v21 = vld [vmem:[#allocation3 + $0x24] ss:$8 sps:$4 sm:$0xff]   ;;  %v1221_v23 = vld [vmem:[#allocation3 + $0x20] ss:$8 sps:$4 sm:$0xff]   ;;  %v1223_v24 = vld [vmem:[#allocation3 + $0x14] ss:$8 sps:$4 sm:$0xff]  }
  0x16   :  { %v1227_v25 = vld [vmem:[#allocation3 + $0x10] ss:$8 sps:$4 sm:$0xff]   ;;  %v1229_v26 = vld [vmem:[#allocation3 + $0x4] ss:$8 sps:$4 sm:$0xff]   ;;  %v1231_v27 = vld [vmem:[#allocation3] ss:$8 sps:$4 sm:$0xff]  }
  0x17   :  { %246 = vmatpush1.bf16.msra.mxu0 %v1201_v7  ;;  %397 = vmatpush1.bf16.msra.mxu1 %v1435_v14  ;;  %v1476_v29 = vand.u32 127, %v33_v28  ;;  %v1373_v34 = vmov 1.0|1.0   ;;  %v154_v39 = vshrl.u32 %v33_v28, 7  ;;  %v151_v41 = vld [vmem:[%s1678_s3] sm:$0x3] }
  0x18   :  { %247 = vmatprep.subr.bf16.mxu0 %v1202_v8  ;;  %398 = vmatprep.subr.bf16.mxu1 %v1442_v15  ;;  %s1374_s16 = smov 64   ;;  %vm382_vm7 = vcmask 523264   ;;  %s1376_s30 = smov [#allocation6]  }
  0x19   :  { %1187 = vset.pattern.permute.xlu1 %v1372_v1  ;;  %v159_v40 = vsub.s32 1, %v154_v39  ;;  %v155_v48 = vsub.s32 0, %v154_v39 }
  0x1b   :  { %248 = vmatpush1.bf16.msra.mxu0 %v1204_v11  ;;  %399 = vmatpush1.bf16.msra.mxu1 %v1448_v18  ;;  %v1495_v42 = vrot.slane %v151_v41, %v159_v40  ;;  %v1499_v49 = vrot.slane %v151_v41, %v155_v48 }
  0x1c   :  { %249 = vmatprep.subr.bf16.mxu0 %v1205_v12  ;;  %400 = vmatprep.subr.bf16.mxu1 %v1454_v19 }
  0x1f   :  { %250 = vmatpush1.bf16.msra.mxu0 %v1209_v16  ;;  %401 = vmatpush1.bf16.msra.mxu1 %v1460_v22 }
  0x20   :  { %251 = vmatprep.subr.bf16.mxu0 %v1211_v17  ;;  %474 = vmatprep.subr.bf16.mxu1 %v1418_v9 }
  0x22   :  { %419 = vmatmul.mubr.bf16.vlgmr.msra.gmra.mxu1 %v1372_v1 }
  0x23   :  { %252 = vmatpush1.bf16.msra.mxu0 %v1215_v20  ;;  %475 = vmatpush1.bf16.msra.mxu1 %v1423_v10 }
  0x24   :  { %253 = vmatprep.subr.bf16.mxu0 %v1217_v21  ;;  %476 = vmatprep.subr.bf16.mxu1 %v1430_v13 }
  0x25   :  { %498 = vmatprep.mubr.bf16.mxu1 %v1372_v1 }
  0x27   :  { %254 = vmatpush1.bf16.msra.mxu0 %v1221_v23  ;;  %477 = vmatpush1.bf16.msra.mxu1 %v1435_v14 }
  0x28   :  { %255 = vmatprep.subr.bf16.mxu0 %v1223_v24  ;;  %478 = vmatprep.subr.bf16.mxu1 %v1442_v15 }
  0x2b   :  { %256 = vmatpush1.bf16.msra.mxu0 %v1227_v25  ;;  %479 = vmatpush1.bf16.msra.mxu1 %v1448_v18 }
  0x2c   :  { %257 = vmatprep.subr.bf16.mxu0 %v1229_v26  ;;  %480 = vmatprep.subr.bf16.mxu1 %v1454_v19  ;;  %v37_v26 = vld [vmem:[%s1675_s0 + $0x10] sm:$0xff] }
  0x2f   :  { %258 = vmatpush1.bf16.msra.mxu0 %v1231_v27  ;;  %481 = vmatpush1.bf16.msra.mxu1 %v1460_v22 }
  0x30   :  { %634 = vmatprep.subr.bf16.mxu0 %v1418_v9  ;;  %554 = vmatprep.subr.bf16.mxu1 %v1418_v9 }
  0x8c   :  { %v77_v30 = vpop.permute.xlu1 %76  ;;  %v45_v31 = vpop.permute.xlu0 %44 }
  0x8d   :  { %vm99_vm0 = vcmp.eq.s32.totalorder %v1476_v29, %v77_v30  ;;  %vm67_vm1 = vcmp.eq.s32.totalorder %v1476_v29, %v45_v31 }
  0x8e   :  { %vm107_vm2 = vmor %vm67_vm1, %vm99_vm0 }
  0x90   :  { %v80_v32 = vpop.permute.xlu1 %79  ;;  %v48_v33 = vpop.permute.xlu0 %47 }
  0x91   :  { %vm100_vm3 = vcmp.eq.s32.totalorder %v1476_v29, %v80_v32  ;;  %vm68_vm4 = vcmp.eq.s32.totalorder %v1476_v29, %v48_v33 }
  0x92   :  { %vm108_vm5 = vmor %vm68_vm4, %vm100_vm3 }
  0x93   :  { %vm1130_vm6 = vmpackc.low %vm108_vm5, %vm107_vm2 }
  0x94   :  { %1131 = vmatmul.mubr.msk.bf16.vlgmr.msra.gmra.mxu0 %vm1130_vm6, %v1373_v34 }
  0x95   :  { %285 = vmatprep.mubr.bf16.mxu0 %v1372_v1  ;;  %635 = vmatpush1.bf16.msra.mxu0 %v1423_v10 }
  0x96   :  { %636 = vmatprep.subr.bf16.mxu0 %v1430_v13 }
  0x99   :  { %637 = vmatpush1.bf16.msra.mxu0 %v1435_v14 }
  0x9a   :  { %638 = vmatprep.subr.bf16.mxu0 %v1442_v15 }
  0x9d   :  { %639 = vmatpush1.bf16.msra.mxu0 %v1448_v18 }
  0x9e   :  { %640 = vmatprep.subr.bf16.mxu0 %v1454_v19 }
  0xa1   :  { %641 = vmatpush1.bf16.msra.mxu0 %v1460_v22 }
  0xa2   :  { %794 = vmatprep.subr.bf16.mxu0 %v1418_v9 }
  0xe2   :  { %v420_v35 = vpop.f32.mrf.mxu1 }
  0xe4   :  { %v422_v36 = vpop.f32.mrf.mxu1 }
  0xe6   :  { %v424_v37 = vpop.f32.mrf.mxu1 }
  0xe8   :  { %v425_v38 = vpop.f32.mrf.mxu1 }
 0x154   :  { %v277_v43 = vpop.f32.mrf.mxu0 }
 0x155   :  { %v278_v50 = vadd.f32 %v277_v43, %v1499_v49 }
 0x156   :  { %v279_v44 = vpop.f32.mrf.mxu0 }
 0x157   :  { %v280_v45 = vadd.f32 %v279_v44, %v1495_v42  ;;  %v427_v51 = vadd.f32 %v420_v35, %v278_v50  ;;  %v38_v35 = vld [vmem:[%s1675_s0 + $0x18] sm:$0xff] }
 0x158   :  { %v281_v7 = vpop.f32.mrf.mxu0 }
 0x159   :  { %v428_v46 = vadd.f32 %v422_v36, %v280_v45  ;;  %v1146_v52 = vmul.f32 -1.442695, %v427_v51  ;;  %v282_v11 = vadd.f32 %v281_v7, %v1499_v49 }
 0x15a   :  { %v283_v8 = vpop.f32.mrf.mxu0 }
 0x15b   :  { %1232 = vtanh.f32 %v428_v46  ;;  %v1147_v62 = vmul.f32 -1.442695, %v428_v46  ;;  %v284_v16 = vadd.f32 %v283_v8, %v1495_v42 }
 0x15c   :  { %1234 = vpow2.f32 %v1146_v52 }
 0x168   :  { %v1233_v47 = vpop.eup %1232 }
 0x169   :  { %444 = vrot.lane.b32.xlu0 %v1233_v47, %s1374_s16  ;;  %v1235_v53 = vpop.eup %1234 }
 0x16a   :  { %v435_v54 = vadd.f32 1.0, %v1235_v53 }
 0x16c   :  { %1236 = vrcp.f32 %v435_v54 }
 0x179   :  { %v1237_v55 = vpop.eup %1236 }
 0x17a   :  { %v442_v58 = vmul.f32 0.0, %v1237_v55 }
 0x1db   :  { %v445_v56 = vpop.permute.xlu0 %444 }
 0x1dc   :  { %v447_v57 = vmul.f32 %v1237_v55, %v445_v56 }
 0x1de   :  { %449 = vrot.lane.b32.xlu1 %v447_v57, %s1374_s16 }
 0x250   :  { %v450_v59 = vpop.permute.xlu1 %449 }
 0x251   :  { %v452_v60 = vadd.f32 %v450_v59, %v442_v58 }
 0x253   :  { %1238 = vtanh.f32 %v452_v60 }
 0x254   :  { %1240 = vpow2.f32 %v1147_v62 }
 0x260   :  { %v1239_v61 = vpop.eup %1238 }
 0x261   :  { %455 = vrot.lane.b32.xlu0 %v1239_v61, %s1374_s16  ;;  %v1241_v63 = vpop.eup %1240 }
 0x262   :  { %v436_v2 = vadd.f32 1.0, %v1241_v63 }
 0x264   :  { %1242 = vrcp.f32 %v436_v2  ;;  %v39_v2 = vld [vmem:[%s1675_s0 + $0x20] sm:$0xff] }
 0x271   :  { %v1243_v3 = vpop.eup %1242 }
 0x2d3   :  { %v456_v4 = vpop.permute.xlu0 %455 }
 0x2d4   :  { %v1504_v5 = vmul.f32 %v1243_v3, %v456_v4  ;;  %v40_v3 = vld [vmem:[%s1675_s0 + $0x28] sm:$0xff]  ;;  %v42_v4 = vld [vmem:[%s1675_s0 + $0x38] sm:$0xff] }
 0x2d6   :  { %v462_v6 = vpack.c.bf16 %v1504_v5, %v1504_v5 }
 0x2d8   :  { %1148 = vmatmul.mubr.msk.bf16.vlgmr.msra.gmra.mxu1 %vm382_vm7, %v462_v6 }
 0x2d9   :  { %555 = vmatpush1.bf16.msra.mxu1 %v1423_v10  ;;  %578 = vmatprep.mubr.bf16.mxu1 %v1372_v1 }
 0x2da   :  { %556 = vmatprep.subr.bf16.mxu1 %v1430_v13 }
 0x2dd   :  { %557 = vmatpush1.bf16.msra.mxu1 %v1435_v14 }
 0x2de   :  { %558 = vmatprep.subr.bf16.mxu1 %v1442_v15 }
 0x2e1   :  { %559 = vmatpush1.bf16.msra.mxu1 %v1448_v18 }
 0x2e2   :  { %560 = vmatprep.subr.bf16.mxu1 %v1454_v19 }
 0x2e5   :  { %561 = vmatpush1.bf16.msra.mxu1 %v1460_v22 }
 0x2e6   :  { %714 = vmatprep.subr.bf16.mxu1 %v1418_v9 }
 0x398   :  { %v500_v12 = vpop.f32.mrf.mxu1 }
 0x399   :  { %v507_v17 = vadd.f32 %v500_v12, %v282_v11 }
 0x39a   :  { %v502_v20 = vpop.f32.mrf.mxu1 }
 0x39b   :  { %v508_v21 = vadd.f32 %v502_v20, %v284_v16  ;;  %v1149_v27 = vmul.f32 -1.442695, %v507_v17  ;;  %v41_v17 = vld [vmem:[%s1675_s0 + $0x30] sm:$0xff] }
 0x39c   :  { %v504_v23 = vpop.f32.mrf.mxu1 }
 0x39d   :  { %1244 = vtanh.f32 %v508_v21  ;;  %v1150_v45 = vmul.f32 -1.442695, %v508_v21 }
 0x39e   :  { %v505_v24 = vpop.f32.mrf.mxu1  ;;  %1246 = vpow2.f32 %v1149_v27 }
 0x3aa   :  { %v1245_v25 = vpop.eup %1244 }
 0x3ab   :  { %524 = vrot.lane.b32.xlu1 %v1245_v25, %s1374_s16  ;;  %v1247_v28 = vpop.eup %1246 }
 0x3ac   :  { %v515_v30 = vadd.f32 1.0, %v1247_v28 }
 0x3ae   :  { %1248 = vrcp.f32 %v515_v30 }
 0x3af   :  { %50 = vperm.xlu1 %1187, %v37_v26  }
 0x3b3   :  { %1188 = vset.pattern.permute.xlu1 %v1371_v0 }
 0x3b4   :  { %82 = vperm.xlu1 %1188, %v37_v26  }
 0x3b8   :  { %1190 = vset.pattern.permute.xlu1 %v1372_v1 }
 0x3bb   :  { %v1249_v31 = vpop.eup %1248 }
 0x3bc   :  { %v522_v36 = vmul.f32 %v1249_v31, %v452_v60 }
 0x41d   :  { %v525_v32 = vpop.permute.xlu1 %524 }
 0x41e   :  { %v527_v33 = vmul.f32 %v1249_v31, %v525_v32 }
 0x420   :  { %529 = vrot.lane.b32.xlu0 %v527_v33, %s1374_s16 }
 0x424   :  { %53 = vperm.xlu0 %1185, %v38_v35  }
 0x428   :  { %1189 = vset.pattern.permute.xlu0 %v1371_v0 }
 0x429   :  { %85 = vperm.xlu0 %1189, %v38_v35  }
 0x42a   :  { %v51_v39 = vpop.permute.xlu1 %50 }
 0x42b   :  { %vm69_vm8 = vcmp.eq.s32.totalorder %v1476_v29, %v51_v39 }
 0x42d   :  { %1191 = vset.pattern.permute.xlu0 %v1372_v1 }
 0x42f   :  { %v83_v40 = vpop.permute.xlu1 %82 }
 0x430   :  { %vm101_vm9 = vcmp.eq.s32.totalorder %v1476_v29, %v83_v40 }
 0x431   :  { %vm109_vm10 = vmor %vm69_vm8, %vm101_vm9 }
 0x492   :  { %v530_v37 = vpop.permute.xlu0 %529 }
 0x493   :  { %v1532_v38 = vadd.f32 %v530_v37, %v522_v36 }
 0x495   :  { %1250 = vtanh.f32 %v1532_v38 }
 0x496   :  { %1252 = vpow2.f32 %v1150_v45 }
 0x49f   :  { %v54_v41 = vpop.permute.xlu0 %53 }
 0x4a0   :  { %vm70_vm11 = vcmp.eq.s32.totalorder %v1476_v29, %v54_v41 }
 0x4a2   :  { %v1251_v43 = vpop.eup %1250 }
 0x4a3   :  { %535 = vrot.lane.b32.xlu1 %v1251_v43, %s1374_s16  ;;  %v1253_v46 = vpop.eup %1252 }
 0x4a4   :  { %v86_v44 = vpop.permute.xlu0 %85  ;;  %v516_v47 = vadd.f32 1.0, %v1253_v46 }
 0x4a5   :  { %vm102_vm12 = vcmp.eq.s32.totalorder %v1476_v29, %v86_v44 }
 0x4a6   :  { %vm110_vm13 = vmor %vm70_vm11, %vm102_vm12  ;;  %1254 = vrcp.f32 %v516_v47 }
 0x4a7   :  { %vm1132_vm14 = vmpackc.low %vm110_vm13, %vm109_vm10 }
 0x4a8   :  { %1133 = vmatmul.mubr.msk.bf16.gmra.mxu0 %vm1132_vm14, %v1373_v34  ;;  %vm1029_vm14 = vcmask 519170  }
 0x4a9   :  { %295 = vmatprep.mubr.bf16.mxu0 %v1372_v1 }
 0x4b3   :  { %v1255_v48 = vpop.eup %1254 }
 0x515   :  { %v536_v50 = vpop.permute.xlu1 %535 }
 0x516   :  { %v1542_v51 = vmul.f32 %v1255_v48, %v536_v50 }
 0x518   :  { %v542_v52 = vpack.c.bf16 %v1542_v51, %v1542_v51  ;;  %v539_v39 = vadd.f32 %v1542_v51, %v1504_v5 }
 0x51a   :  { %1151 = vmatmul.mubr.msk.bf16.vlgmr.msra.gmra.mxu1 %vm382_vm7, %v542_v52 }
 0x51b   :  { %715 = vmatpush1.bf16.msra.mxu1 %v1423_v10  ;;  %738 = vmatprep.mubr.bf16.mxu1 %v1372_v1 }
 0x51c   :  { %716 = vmatprep.subr.bf16.mxu1 %v1430_v13 }
 0x51f   :  { %717 = vmatpush1.bf16.msra.mxu1 %v1435_v14 }
 0x520   :  { %718 = vmatprep.subr.bf16.mxu1 %v1442_v15 }
 0x523   :  { %719 = vmatpush1.bf16.msra.mxu1 %v1448_v18 }
 0x524   :  { %720 = vmatprep.subr.bf16.mxu1 %v1454_v19 }
 0x527   :  { %721 = vmatpush1.bf16.msra.mxu1 %v1460_v22 }
 0x528   :  { %874 = vmatprep.subr.bf16.mxu1 %v1418_v9 }
 0x568   :  { %v287_v53 = vpop.f32.mrf.mxu0 }
 0x569   :  { %v288_v55 = vadd.f32 %v287_v53, %v1499_v49 }
 0x56a   :  { %v289_v54 = vpop.f32.mrf.mxu0 }
 0x56b   :  { %v290_v57 = vadd.f32 %v289_v54, %v1495_v42 }
 0x5da   :  { %v580_v56 = vpop.f32.mrf.mxu1 }
 0x5db   :  { %v587_v58 = vadd.f32 %v580_v56, %v288_v55 }
 0x5dc   :  { %v582_v59 = vpop.f32.mrf.mxu1 }
 0x5dd   :  { %v588_v60 = vadd.f32 %v582_v59, %v290_v57  ;;  %v1152_v6 = vmul.f32 -1.442695, %v587_v58 }
 0x5de   :  { %v584_v61 = vpop.f32.mrf.mxu1 }
 0x5df   :  { %1256 = vtanh.f32 %v588_v60  ;;  %v1153_v33 = vmul.f32 -1.442695, %v588_v60 }
 0x5e0   :  { %v585_v62 = vpop.f32.mrf.mxu1  ;;  %1258 = vpow2.f32 %v1152_v6 }
 0x5ec   :  { %v1257_v63 = vpop.eup %1256 }
 0x5ed   :  { %604 = vrot.lane.b32.xlu1 %v1257_v63, %s1374_s16  ;;  %v1259_v7 = vpop.eup %1258 }
 0x5ee   :  { %v595_v8 = vadd.f32 1.0, %v1259_v7 }
 0x5f0   :  { %1260 = vrcp.f32 %v595_v8 }
 0x5f1   :  { %56 = vperm.xlu1 %1190, %v39_v2  }
 0x5f5   :  { %1192 = vset.pattern.permute.xlu1 %v1371_v0 }
 0x5f6   :  { %88 = vperm.xlu1 %1192, %v39_v2  }
 0x5fa   :  { %91 = vperm.xlu1 %1192, %v40_v3  }
 0x5fd   :  { %v1261_v11 = vpop.eup %1260 }
 0x5fe   :  { %1193 = vset.pattern.permute.xlu1 %v1372_v1  ;;  %v602_v21 = vmul.f32 %v1261_v11, %v1532_v38 }
 0x5ff   :  { %65 = vperm.xlu1 %1193, %v42_v4  }
 0x603   :  { %1195 = vset.pattern.permute.xlu1 %v1371_v0 }
 0x604   :  { %97 = vperm.xlu1 %1195, %v42_v4  }
 0x65f   :  { %v605_v12 = vpop.permute.xlu1 %604 }
 0x660   :  { %v607_v16 = vmul.f32 %v1261_v11, %v605_v12 }
 0x662   :  { %609 = vrot.lane.b32.xlu0 %v607_v16, %s1374_s16 }
 0x666   :  { %59 = vperm.xlu0 %1191, %v40_v3  }
 0x66a   :  { %62 = vperm.xlu0 %1191, %v41_v17  }
 0x66c   :  { %v57_v20 = vpop.permute.xlu1 %56 }
 0x66d   :  { %vm71_vm15 = vcmp.eq.s32.totalorder %v1476_v29, %v57_v20 }
 0x66e   :  { %1194 = vset.pattern.permute.xlu0 %v1371_v0 }
 0x66f   :  { %94 = vperm.xlu0 %1194, %v41_v17  }
 0x671   :  { %v89_v24 = vpop.permute.xlu1 %88 }
 0x672   :  { %vm103_vm0 = vcmp.eq.s32.totalorder %v1476_v29, %v89_v24 }
 0x673   :  { %vm111_vm2 = vmor %vm71_vm15, %vm103_vm0  ;;  %vm1022_vm15 = vcmask 517120   ;;  %vm1065_vm0 = vcmask 1024  }
 0x675   :  { %v92_v26 = vpop.permute.xlu1 %91 }
 0x676   :  { %vm104_vm1 = vcmp.eq.s32.totalorder %v1476_v29, %v92_v26 }
 0x67a   :  { %v66_v27 = vpop.permute.xlu1 %65 }
 0x67b   :  { %vm74_vm6 = vcmp.eq.s32.totalorder %v1476_v29, %v66_v27 }
 0x67f   :  { %v98_v30 = vpop.permute.xlu1 %97 }
 0x680   :  { %vm106_vm8 = vcmp.eq.s32.totalorder %v1476_v29, %v98_v30 }
 0x681   :  { %vm114_vm10 = vmor %vm74_vm6, %vm106_vm8 }
 0x6d4   :  { %v610_v23 = vpop.permute.xlu0 %609 }
 0x6d5   :  { %v1577_v25 = vadd.f32 %v610_v23, %v602_v21 }
 0x6d7   :  { %1262 = vtanh.f32 %v1577_v25 }
 0x6d8   :  { %1264 = vpow2.f32 %v1153_v33 }
 0x6e1   :  { %v60_v0 = vpop.permute.xlu0 %59 }
 0x6e2   :  { %vm72_vm3 = vcmp.eq.s32.totalorder %v1476_v29, %v60_v0 }
 0x6e3   :  { %vm112_vm4 = vmor %vm72_vm3, %vm104_vm1 }
 0x6e4   :  { %v1263_v28 = vpop.eup %1262  ;;  %vm1134_vm5 = vmpackc.low %vm112_vm4, %vm111_vm2 }
 0x6e5   :  { %615 = vrot.lane.b32.xlu1 %v1263_v28, %s1374_s16  ;;  %1135 = vmatmul.mubr.msk.bf16.gmra.mxu0 %vm1134_vm5, %v1373_v34  ;;  %v63_v31 = vpop.permute.xlu0 %62  ;;  %v1265_v35 = vpop.eup %1264 }
 0x6e6   :  { %305 = vmatprep.mubr.bf16.mxu0 %v1372_v1  ;;  %vm73_vm9 = vcmp.eq.s32.totalorder %v1476_v29, %v63_v31  ;;  %v596_v36 = vadd.f32 1.0, %v1265_v35 }
 0x6e8   :  { %1266 = vrcp.f32 %v596_v36 }
 0x6ea   :  { %v95_v32 = vpop.permute.xlu0 %94 }
 0x6eb   :  { %vm105_vm11 = vcmp.eq.s32.totalorder %v1476_v29, %v95_v32  ;;  %v291_v29 = vpop.f32.mrf.mxu0 }
 0x6ec   :  { %vm113_vm12 = vmor %vm73_vm9, %vm105_vm11  ;;  %v292_v52 = vadd.f32 %v291_v29, %v1499_v49 }
 0x6ed   :  { %vm1136_vm13 = vmpackc.low %vm114_vm10, %vm113_vm12 }
 0x6ee   :  { %1137 = vmatmul.mubr.msk.bf16.gmra.mxu0 %vm1136_vm13, %v1373_v34  ;;  %v293_v34 = vpop.f32.mrf.mxu0 }
 0x6ef   :  { %658 = vmatprep.mubr.bf16.mxu0 %v1372_v1 }
 0x6f5   :  { %v1267_v37 = vpop.eup %1266 }
 0x757   :  { %v616_v38 = vpop.permute.xlu1 %615 }
 0x758   :  { %v618_v40 = vmul.f32 %v1267_v37, %v616_v38 }
 0x75a   :  { %v619_v41 = vadd.f32 %v618_v40, %v539_v39  ;;  %v622_v43 = vpack.c.bf16 %v618_v40, %v618_v40 }
 0x75c   :  { %1154 = vmatmul.mubr.msk.bf16.vlgmr.msra.gmra.mxu0 %vm382_vm7, %v622_v43 }
 0x75d   :  { %795 = vmatpush1.bf16.msra.mxu0 %v1423_v10  ;;  %818 = vmatprep.mubr.bf16.mxu0 %v1372_v1 }
 0x75e   :  { %796 = vmatprep.subr.bf16.mxu0 %v1430_v13 }
 0x761   :  { %797 = vmatpush1.bf16.msra.mxu0 %v1435_v14 }
 0x762   :  { %798 = vmatprep.subr.bf16.mxu0 %v1442_v15 }
 0x765   :  { %799 = vmatpush1.bf16.msra.mxu0 %v1448_v18 }
 0x766   :  { %800 = vmatprep.subr.bf16.mxu0 %v1454_v19 }
 0x769   :  { %801 = vmatpush1.bf16.msra.mxu0 %v1460_v22 }
 0x76a   :  { %954 = vmatprep.subr.bf16.mxu0 %v1418_v9  ;;  %v294_v9 = vadd.f32 %v293_v34, %v1495_v42 }
 0x7a5   :  { %v297_v5 = vpop.f32.mrf.mxu0 }
 0x7a7   :  { %v299_v44 = vpop.f32.mrf.mxu0 }
 0x7a8   :  { %v300_v27 = vadd.f32 %v299_v44, %v1495_v42 }
 0x7a9   :  { %v1605_v45 = vpop.f32.mrf.mxu0 }
 0x7ab   :  { %v1607_v46 = vpop.f32.mrf.mxu0 }
 0x7ae   :  { %v1609_v47 = vpop.f32.mrf.mxu0 }
 0x7b0   :  { %v1611_v48 = vpop.f32.mrf.mxu0 }
 0x7b2   :  { %v1613_v50 = vpop.f32.mrf.mxu0 }
 0x7b4   :  { %v1615_v51 = vpop.f32.mrf.mxu0 }
 0x81c   :  { %v660_v53 = vpop.f32.mrf.mxu0 }
 0x81d   :  { %v667_v54 = vadd.f32 %v660_v53, %v292_v52 }
 0x81e   :  { %v662_v55 = vpop.f32.mrf.mxu0 }
 0x81f   :  { %v668_v56 = vadd.f32 %v662_v55, %v294_v9  ;;  %v1155_v60 = vmul.f32 -1.442695, %v667_v54 }
 0x820   :  { %v664_v57 = vpop.f32.mrf.mxu0 }
 0x821   :  { %1268 = vtanh.f32 %v668_v56  ;;  %v1156_v11 = vmul.f32 -1.442695, %v668_v56  ;;  %v302_v57 = vadd.f32 %v1605_v45, %v1499_v49 }
 0x822   :  { %v665_v58 = vpop.f32.mrf.mxu0  ;;  %1270 = vpow2.f32 %v1155_v60 }
 0x82e   :  { %v1269_v59 = vpop.eup %1268 }
 0x82f   :  { %684 = vrot.lane.b32.xlu0 %v1269_v59, %s1374_s16  ;;  %v1271_v61 = vpop.eup %1270 }
 0x830   :  { %v675_v62 = vadd.f32 1.0, %v1271_v61 }
 0x832   :  { %1272 = vrcp.f32 %v675_v62 }
 0x83f   :  { %v1273_v63 = vpop.eup %1272 }
 0x840   :  { %v682_v4 = vmul.f32 %v1273_v63, %v1577_v25  ;;  %v298_v25 = vadd.f32 %v297_v5, %v1499_v49 }
 0x8a1   :  { %v685_v2 = vpop.permute.xlu0 %684 }
 0x8a2   :  { %v687_v3 = vmul.f32 %v1273_v63, %v685_v2 }
 0x8a4   :  { %689 = vrot.lane.b32.xlu1 %v687_v3, %s1374_s16 }
 0x916   :  { %v690_v6 = vpop.permute.xlu1 %689 }
 0x917   :  { %v692_v7 = vadd.f32 %v690_v6, %v682_v4 }
 0x919   :  { %1274 = vtanh.f32 %v692_v7 }
 0x91a   :  { %1276 = vpow2.f32 %v1156_v11 }
 0x926   :  { %v1275_v8 = vpop.eup %1274 }
 0x927   :  { %695 = vrot.lane.b32.xlu0 %v1275_v8, %s1374_s16  ;;  %v1277_v12 = vpop.eup %1276 }
 0x928   :  { %v676_v16 = vadd.f32 1.0, %v1277_v12 }
 0x92a   :  { %1278 = vrcp.f32 %v676_v16 }
 0x937   :  { %v1279_v17 = vpop.eup %1278 }
 0x999   :  { %v696_v20 = vpop.permute.xlu0 %695 }
 0x99a   :  { %v698_v21 = vmul.f32 %v1279_v17, %v696_v20  ;;  %v308_v20 = vadd.f32 %v1609_v47, %v1499_v49 }
 0x99c   :  { %v699_v23 = vadd.f32 %v698_v21, %v619_v41  ;;  %v702_v24 = vpack.c.bf16 %v698_v21, %v698_v21 }
 0x99e   :  { %1157 = vmatmul.mubr.msk.bf16.vlgmr.msra.gmra.mxu1 %vm382_vm7, %v702_v24 }
 0x99f   :  { %875 = vmatpush1.bf16.msra.mxu1 %v1423_v10  ;;  %898 = vmatprep.mubr.bf16.mxu1 %v1372_v1 }
 0x9a0   :  { %876 = vmatprep.subr.bf16.mxu1 %v1430_v13 }
 0x9a3   :  { %877 = vmatpush1.bf16.msra.mxu1 %v1435_v14 }
 0x9a4   :  { %878 = vmatprep.subr.bf16.mxu1 %v1442_v15 }
 0x9a7   :  { %879 = vmatpush1.bf16.msra.mxu1 %v1448_v18 }
 0x9a8   :  { %880 = vmatprep.subr.bf16.mxu1 %v1454_v19 }
 0x9ab   :  { %881 = vmatpush1.bf16.msra.mxu1 %v1460_v22 }
 0xa5e   :  { %v740_v26 = vpop.f32.mrf.mxu1 }
 0xa5f   :  { %v747_v0 = vadd.f32 %v740_v26, %v298_v25 }
 0xa60   :  { %v742_v28 = vpop.f32.mrf.mxu1 }
 0xa61   :  { %v748_v30 = vadd.f32 %v742_v28, %v300_v27  ;;  %v1158_v35 = vmul.f32 -1.442695, %v747_v0 }
 0xa62   :  { %v744_v31 = vpop.f32.mrf.mxu1 }
 0xa63   :  { %1280 = vtanh.f32 %v748_v30  ;;  %v1159_v5 = vmul.f32 -1.442695, %v748_v30 }
 0xa64   :  { %v745_v32 = vpop.f32.mrf.mxu1  ;;  %1282 = vpow2.f32 %v1158_v35 }
 0xa70   :  { %v1281_v33 = vpop.eup %1280 }
 0xa71   :  { %764 = vrot.lane.b32.xlu1 %v1281_v33, %s1374_s16  ;;  %v1283_v36 = vpop.eup %1282 }
 0xa72   :  { %v755_v37 = vadd.f32 1.0, %v1283_v36 }
 0xa74   :  { %1284 = vrcp.f32 %v755_v37 }
 0xa81   :  { %v1285_v38 = vpop.eup %1284 }
 0xa82   :  { %v762_v41 = vmul.f32 %v1285_v38, %v692_v7 }
 0xae3   :  { %v765_v39 = vpop.permute.xlu1 %764 }
 0xae4   :  { %v767_v40 = vmul.f32 %v1285_v38, %v765_v39 }
 0xae6   :  { %769 = vrot.lane.b32.xlu0 %v767_v40, %s1374_s16 }
 0xb58   :  { %v770_v43 = vpop.permute.xlu0 %769 }
 0xb59   :  { %v772_v29 = vadd.f32 %v770_v43, %v762_v41 }
 0xb5b   :  { %1286 = vtanh.f32 %v772_v29 }
 0xb5c   :  { %1288 = vpow2.f32 %v1159_v5 }
 0xb68   :  { %v1287_v34 = vpop.eup %1286 }
 0xb69   :  { %775 = vrot.lane.b32.xlu1 %v1287_v34, %s1374_s16  ;;  %v1289_v44 = vpop.eup %1288 }
 0xb6a   :  { %v756_v52 = vadd.f32 1.0, %v1289_v44 }
 0xb6c   :  { %1290 = vrcp.f32 %v756_v52  ;;  %v312_v52 = vadd.f32 %v1613_v50, %v1499_v49 }
 0xb79   :  { %v1291_v53 = vpop.eup %1290 }
 0xbdb   :  { %v776_v9 = vpop.permute.xlu1 %775 }
 0xbdc   :  { %v778_v54 = vmul.f32 %v1291_v53, %v776_v9  ;;  %v314_v9 = vadd.f32 %v1615_v51, %v1495_v42 }
 0xbde   :  { %v779_v55 = vadd.f32 %v778_v54, %v699_v23  ;;  %v782_v56 = vpack.c.bf16 %v778_v54, %v778_v54  ;;  %v310_v23 = vadd.f32 %v1611_v48, %v1495_v42 }
 0xbe0   :  { %1160 = vmatmul.mubr.msk.bf16.vlgmr.msra.gmra.mxu0 %vm382_vm7, %v782_v56 }
 0xbe1   :  { %955 = vmatpush1.bf16.msra.mxu0 %v1423_v10  ;;  %978 = vmatprep.mubr.bf16.mxu0 %v1372_v1  ;;  %v304_v10 = vadd.f32 %v1607_v46, %v1495_v42 }
 0xbe2   :  { %956 = vmatprep.subr.bf16.mxu0 %v1430_v13 }
 0xbe5   :  { %957 = vmatpush1.bf16.msra.mxu0 %v1435_v14 }
 0xbe6   :  { %958 = vmatprep.subr.bf16.mxu0 %v1442_v15 }
 0xbe9   :  { %959 = vmatpush1.bf16.msra.mxu0 %v1448_v18 }
 0xbea   :  { %960 = vmatprep.subr.bf16.mxu0 %v1454_v19 }
 0xbed   :  { %961 = vmatpush1.bf16.msra.mxu0 %v1460_v22 }
 0xca0   :  { %v820_v58 = vpop.f32.mrf.mxu0 }
 0xca1   :  { %v827_v1 = vadd.f32 %v820_v58, %v302_v57 }
 0xca2   :  { %v822_v59 = vpop.f32.mrf.mxu0 }
 0xca3   :  { %v828_v13 = vadd.f32 %v822_v59, %v304_v10  ;;  %v1161_v18 = vmul.f32 -1.442695, %v827_v1 }
 0xca4   :  { %v824_v60 = vpop.f32.mrf.mxu0 }
 0xca5   :  { %1292 = vtanh.f32 %v828_v13  ;;  %v1162_v4 = vmul.f32 -1.442695, %v828_v13 }
 0xca6   :  { %v825_v14 = vpop.f32.mrf.mxu0  ;;  %1294 = vpow2.f32 %v1161_v18 }
 0xcb2   :  { %v1293_v15 = vpop.eup %1292 }
 0xcb3   :  { %844 = vrot.lane.b32.xlu0 %v1293_v15, %s1374_s16  ;;  %v1295_v19 = vpop.eup %1294 }
 0xcb4   :  { %v835_v22 = vadd.f32 1.0, %v1295_v19 }
 0xcb6   :  { %1296 = vrcp.f32 %v835_v22 }
 0xcc3   :  { %v1297_v61 = vpop.eup %1296 }
 0xcc4   :  { %v842_v46 = vmul.f32 %v1297_v61, %v772_v29 }
 0xd25   :  { %v845_v45 = vpop.permute.xlu0 %844 }
 0xd26   :  { %v847_v62 = vmul.f32 %v1297_v61, %v845_v45 }
 0xd28   :  { %849 = vrot.lane.b32.xlu1 %v847_v62, %s1374_s16 }
 0xd9a   :  { %v850_v63 = vpop.permute.xlu1 %849 }
 0xd9b   :  { %v852_v2 = vadd.f32 %v850_v63, %v842_v46 }
 0xd9d   :  { %1298 = vtanh.f32 %v852_v2 }
 0xd9e   :  { %1300 = vpow2.f32 %v1162_v4 }
 0xdaa   :  { %v1299_v3 = vpop.eup %1298 }
 0xdab   :  { %855 = vrot.lane.b32.xlu0 %v1299_v3, %s1374_s16  ;;  %v1301_v6 = vpop.eup %1300 }
 0xdac   :  { %v836_v7 = vadd.f32 1.0, %v1301_v6 }
 0xdae   :  { %1302 = vrcp.f32 %v836_v7 }
 0xdbb   :  { %v1303_v8 = vpop.eup %1302 }
 0xe1d   :  { %v856_v11 = vpop.permute.xlu0 %855 }
 0xe1e   :  { %v858_v12 = vmul.f32 %v1303_v8, %v856_v11 }
 0xe20   :  { %v859_v16 = vadd.f32 %v858_v12, %v779_v55  ;;  %v862_v17 = vpack.c.bf16 %v858_v12, %v858_v12 }
 0xe22   :  { %1163 = vmatmul.mubr.msk.bf16.vlgmr.msra.gmra.mxu1 %vm382_vm7, %v862_v17 }
 0xee2   :  { %v900_v21 = vpop.f32.mrf.mxu1 }
 0xee3   :  { %v907_v24 = vadd.f32 %v900_v21, %v308_v20 }
 0xee4   :  { %v902_v25 = vpop.f32.mrf.mxu1 }
 0xee5   :  { %v908_v26 = vadd.f32 %v902_v25, %v310_v23  ;;  %v1164_v30 = vmul.f32 -1.442695, %v907_v24 }
 0xee6   :  { %v904_v27 = vpop.f32.mrf.mxu1 }
 0xee7   :  { %1304 = vtanh.f32 %v908_v26  ;;  %v1165_v39 = vmul.f32 -1.442695, %v908_v26 }
 0xee8   :  { %v905_v0 = vpop.f32.mrf.mxu1  ;;  %1306 = vpow2.f32 %v1164_v30 }
 0xef4   :  { %v1305_v28 = vpop.eup %1304 }
 0xef5   :  { %924 = vrot.lane.b32.xlu1 %v1305_v28, %s1374_s16  ;;  %v1307_v31 = vpop.eup %1306 }
 0xef6   :  { %v915_v32 = vadd.f32 1.0, %v1307_v31 }
 0xef8   :  { %1308 = vrcp.f32 %v915_v32 }
 0xf05   :  { %v1309_v33 = vpop.eup %1308 }
 0xf06   :  { %v922_v48 = vmul.f32 %v1309_v33, %v852_v2 }
 0xf67   :  { %v925_v47 = vpop.permute.xlu1 %924 }
 0xf68   :  { %v927_v35 = vmul.f32 %v1309_v33, %v925_v47 }
 0xf6a   :  { %929 = vrot.lane.b32.xlu0 %v927_v35, %s1374_s16 }
 0xfdc   :  { %v930_v36 = vpop.permute.xlu0 %929 }
 0xfdd   :  { %v932_v37 = vadd.f32 %v930_v36, %v922_v48 }
 0xfdf   :  { %1310 = vtanh.f32 %v932_v37 }
 0xfe0   :  { %1312 = vpow2.f32 %v1165_v39 }
 0xfec   :  { %v1311_v38 = vpop.eup %1310 }
 0xfed   :  { %935 = vrot.lane.b32.xlu1 %v1311_v38, %s1374_s16  ;;  %v1313_v40 = vpop.eup %1312  ;;  %v1375_v38 = vmov 0.0  }
 0xfee   :  { %v916_v41 = vadd.f32 1.0, %v1313_v40 }
 0xff0   :  { %1314 = vrcp.f32 %v916_v41 }
 0xffd   :  { %v1315_v43 = vpop.eup %1314 }
0x105f   :  { %v936_v29 = vpop.permute.xlu1 %935 }
0x1060   :  { %v938_v34 = vmul.f32 %v1315_v43, %v936_v29 }
0x1062   :  { %v939_v5 = vadd.f32 %v938_v34, %v859_v16  ;;  %v942_v44 = vpack.c.bf16 %v938_v34, %v938_v34 }
0x1064   :  { %1166 = vmatmul.mubr.msk.bf16.vlgmr.msra.gmra.mxu0 %vm382_vm7, %v942_v44  ;;  %vm1036_vm7 = vcmask 521220  }
0x1124   :  { %v980_v53 = vpop.f32.mrf.mxu0 }
0x1125   :  { %v987_v54 = vadd.f32 %v980_v53, %v312_v52 }
0x1126   :  { %v982_v55 = vpop.f32.mrf.mxu0 }
0x1127   :  { %v988_v56 = vadd.f32 %v982_v55, %v314_v9  ;;  %v1167_v1 = vmul.f32 -1.442695, %v987_v54 }
0x1128   :  { %v984_v57 = vpop.f32.mrf.mxu0 }
0x1129   :  { %1316 = vtanh.f32 %v988_v56  ;;  %v1168_v18 = vmul.f32 -1.442695, %v988_v56 }
0x112a   :  { %v985_v58 = vpop.f32.mrf.mxu0  ;;  %1318 = vpow2.f32 %v1167_v1 }
0x1136   :  { %v1317_v10 = vpop.eup %1316 }
0x1137   :  { %1004 = vrot.lane.b32.xlu0 %v1317_v10, %s1374_s16  ;;  %v1319_v59 = vpop.eup %1318 }
0x1138   :  { %v995_v13 = vadd.f32 1.0, %v1319_v59 }
0x113a   :  { %1320 = vrcp.f32 %v995_v13 }
0x1147   :  { %v1321_v60 = vpop.eup %1320 }
0x1148   :  { %v1002_v42 = vmul.f32 %v1321_v60, %v932_v37 }
0x11a9   :  { %v1005_v49 = vpop.permute.xlu0 %1004 }
0x11aa   :  { %v1007_v50 = vmul.f32 %v1321_v60, %v1005_v49 }
0x11ac   :  { %1009 = vrot.lane.b32.xlu1 %v1007_v50, %s1374_s16 }
0x121e   :  { %v1010_v51 = vpop.permute.xlu1 %1009 }
0x121f   :  { %v1012_v14 = vadd.f32 %v1010_v51, %v1002_v42 }
0x1221   :  { %1322 = vtanh.f32 %v1012_v14 }
0x1222   :  { %1324 = vpow2.f32 %v1168_v18 }
0x122e   :  { %v1323_v15 = vpop.eup %1322 }
0x122f   :  { %1015 = vrot.lane.b32.xlu0 %v1323_v15, %s1374_s16  ;;  %v1325_v19 = vpop.eup %1324 }
0x1230   :  { %v996_v22 = vadd.f32 1.0, %v1325_v19 }
0x1232   :  { %1326 = vrcp.f32 %v996_v22 }
0x123f   :  { %v1327_v61 = vpop.eup %1326 }
0x12a1   :  { %v1016_v45 = vpop.permute.xlu0 %1015 }
0x12a2   :  { %v1018_v62 = vmul.f32 %v1327_v61, %v1016_v45 }
0x12a4   :  { %v1019_v46 = vadd.f32 %v1018_v62, %v939_v5 }
0x12a6   :  { %v1020_v63 = vmul.f32 0.125, %v1019_v46 }
0x12a8   :  { %v1021_v2 = vmul.f32 %v1020_v63, %v1020_v63 }
0x12aa   :  { %v1037_v3 = vsel %vm1036_vm7, %v1021_v2, 0.0  ;;  %v1030_v4 = vsel %vm1029_vm14, %v1021_v2, 0.0  ;;  %v1023_v6 = vsel %vm1022_vm15, %v1021_v2, 0.0 }
0x12ab   :  { %1038 = vadd.xlane.f32.xlu0 %v1037_v3  ;;  %1031 = vadd.xlane.f32.xlu1 %v1030_v4 }
0x12af   :  { %1024 = vadd.xlane.f32.xlu0 %v1023_v6 }
0x1334   :  { %v1039_v7 = vpop.xlane.xlu0 %1038  ;;  %v1032_v8 = vpop.xlane.xlu1 %1031 }
0x1335   :  { %v1040_v11 = vmax.f32 %v1039_v7, 1e-24  ;;  %v1033_v12 = vmax.f32 %v1032_v8, 1e-24 }
0x1337   :  { %1328 = vrsqrt.f32 %v1040_v11 }
0x1338   :  { %1330 = vrsqrt.f32 %v1033_v12  ;;  %v1025_v16 = vpop.xlane.xlu0 %1024 }
0x1339   :  { %v1026_v17 = vmax.f32 %v1025_v16, 1e-24 }
0x133b   :  { %1332 = vrsqrt.f32 %v1026_v17 }
0x1344   :  { %v1329_v20 = vpop.eup %1328 }
0x1345   :  { %v1331_v21 = vpop.eup %1330  ;;  %v1042_v23 = vmul.f32 %v1329_v20, %v1020_v63 }
0x1346   :  { %v1035_v24 = vmul.f32 %v1331_v21, %v1020_v63 }
0x1347   :  { %v1052_v27 = vrot.slane %v1042_v23, 4 }
0x1348   :  { %v1333_v25 = vpop.eup %1332  ;;  %v1044_v0 = vrot.slane %v1035_v24, 2 }
0x1349   :  { %v1028_v26 = vmul.f32 %v1333_v25, %v1020_v63 }
0x134b   :  { %v1054_v28 = vmul.f32 %v1052_v27, %v1028_v26  ;;  %v1046_v30 = vmul.f32 %v1044_v0, %v1028_v26 }
0x134d   :  { %v1055_v31 = vsel %vm1022_vm15, %v1054_v28, 0.0  ;;  %v1047_v32 = vsel %vm1022_vm15, %v1046_v30, 0.0 }
0x134e   :  { %1056 = vadd.xlane.f32.xlu0 %v1055_v31  ;;  %1048 = vadd.xlane.f32.xlu1 %v1047_v32 }
0x13d7   :  { %v1057_v33 = vpop.xlane.xlu0 %1056  ;;  %v1049_v47 = vpop.xlane.xlu1 %1048 }
0x13d8   :  { %v1058_v35 = vsub.f32 1.0, %v1057_v33  ;;  %v1050_v48 = vsub.f32 1.0, %v1049_v47 }
0x13da   :  { %v1059_v36 = vsub.f32 %v1050_v48, %v1058_v35 }
0x13dc   :  { %v1060_v37 = vadd.f32 0.1, %v1059_v36 }
0x13de   :  { %vm1061_vm1 = vcmp.ge.f32.partialorder %v1060_v37, 0.0 }
0x13df   :  { %v1169_v39 = vsel %vm1061_vm1, 1.0, %v1375_v38 }
0x13e0   :  { %v1076_v40 = vsel %vm1065_vm0, %v1169_v39, 0.0  ;;  %v1064_v41 = vmul.f32 %v1169_v39, %v1060_v37 }
0x13e1   :  { %1077 = vadd.xlane.f32.xlu0 %v1076_v40 }
0x13e2   :  { %v1066_v43 = vsel %vm1065_vm0, %v1064_v41, 0.0 }
0x13e3   :  { %1067 = vadd.xlane.f32.xlu1 %v1066_v43 }
0x146a   :  { %v1078_v29 = vpop.xlane.xlu0 %1077 }
0x146b   :  { %v1079_v34 = vrot.slane %v1078_v29, 4 }
0x146c   :  { %v1068_v5 = vpop.xlane.xlu1 %1067 }
0x146d   :  { %v1080_v44 = vadd.f32 %v1079_v34, %v1078_v29  ;;  %v1069_v52 = vrot.slane %v1068_v5, 4 }
0x146f   :  { %v1081_v53 = vrot.slane %v1080_v44, 2  ;;  %v1070_v9 = vadd.f32 %v1069_v52, %v1068_v5 }
0x1471   :  { %v1082_v54 = vadd.f32 %v1081_v53, %v1080_v44  ;;  %v1071_v55 = vrot.slane %v1070_v9, 2 }
0x1473   :  { %v1072_v56 = vadd.f32 %v1071_v55, %v1070_v9  ;;  %v1083_v57 = vrot.slane %v1082_v54, 1 }
0x1475   :  { %v1073_v58 = vrot.slane %v1072_v56, 1  ;;  %v1084_v1 = vadd.f32 %v1083_v57, %v1082_v54 }
0x1477   :  { %v1074_v10 = vadd.f32 %v1073_v58, %v1072_v56 }
0x1479   :  { %1170 = vpush %v1074_v10 }
0x147a   :  { %1172 = vpush %v1084_v1 }
0x14aa   :  { %s1171_s0 = spop %1170 }
0x14ab   :  { %s1173_s27 = spop %1172 }
0x14ac   :  { %v1086_v59 = vstv %s1173_s27 }
0x14ad   :  { %1334 = vrcp.f32 %v1086_v59 }
0x14ba   :  { %v1335_v13 = vpop.eup %1334 }
0x14bb   :  { %1174 = vpush %v1335_v13 }
0x14ec   :  { %s1175_s28 = spop %1174 }
0x14ed   :  { %s1089_s29 = smul.f32 %s1175_s28, %s1171_s0 }
0x14ef   :  { %1091 = sst [smem:[#allocation6]] %s1089_s29 }
0x14f0   :  { %1099 = dma.smem_to_hbm %s1376_s30, 16, %s1679_s4, [#allocation5]  }
0x14f1   :  { %1366 = dma.done.wait [#allocation5], 16  }
0x14f2   :  { %1367 = vsyncadd [#allocation5], 4294967280 }
0x14f3   :  { %1103 = sfence }
0x14f4   :  { %1104 = vsyncpa [#allocation4], 1 }
0x14f5   :  { %1105 = vsyncpa [#allocation5], 1 }

</bundles_post_ra>
